<compile_context>
chip_gen: v5e
topology: v5e:2x2
jax: 0.10.0
libtpu: 0.0.40
codegen_flags: <defaults>
</compile_context>

<pallas_src>
import jax
import jax.numpy as jnp
from jax.experimental import pallas as pl
from jax.experimental.pallas import tpu as pltpu


_VMEM_LIMIT_BYTES = 32 * 1024 * 1024   # explicit scoped-VMEM limit, safe on v5e/v6e/v7x
_TILE_VMEM_BUDGET = 12 * 1024 * 1024   # total live tile bytes (double-buffered in + out)


# ----------------------------- kernel bodies --------------------------------

def _copy_tiled_kernel(x_ref, o_ref):
    # NOTE (correctness): edge blocks along the column axis deliberately read
    # input columns >= t_out (chomped region and/or Pallas-padded OOB columns);
    # every such column maps to an out-of-bounds output lane whose store is
    # masked off, so the result still equals x[..., :t_out].  This relies on
    # Pallas' pad-on-read / mask-on-write handling of ragged boundary blocks --
    # keep that in mind if this is ever rewritten with manual DMA.
    o_ref[...] = x_ref[...]


def _copy_fullrow_kernel(x_ref, o_ref):
    # x_ref: (tr, T), o_ref: (tr, t_out).  The static slice below IS the chomp;
    # both HBM DMAs are contiguous slabs.
    o_ref[...] = x_ref[:, : o_ref.shape[1]]


def _make_tiled_kernel(post_op):
    def k(x_ref, o_ref):
        o_ref[...] = post_op(x_ref[...]).astype(o_ref.dtype)
    return k


def _make_fullrow_kernel(post_op):
    def k(x_ref, o_ref):
        o_ref[...] = post_op(x_ref[:, : o_ref.shape[1]]).astype(o_ref.dtype)
    return k


# ----------------------------- tiling helpers --------------------------------

def _round_up(n: int, m: int) -> int:
    return ((n + m - 1) // m) * m


def _cdiv(a: int, b: int) -> int:
    return -(-a // b)


def _pick_row_tile(rows: int, cap: int, sublane: int) -> int:
    """Pick a row-tile size <= cap (sublane-quantized).

    Prefers an exact divisor of the (padded) row count so edge tiles are not
    ragged/masked, then nudges toward an even tile count so v7x's two
    TensorCores split the parallel row axis evenly (free on v5e/v6e).
    """
    rows_pad = _round_up(rows, sublane)
    cap = max(sublane, min(cap - cap % sublane, rows_pad))

    tr = cap
    d = cap
    while d >= max(sublane, cap // 2):
        if rows_pad % d == 0:
            tr = d
            break
        d -= sublane

    n = _cdiv(rows, tr)
    if n >= 3 and n % 2 == 1:
        tr_even = max(sublane, _round_up(_cdiv(rows, n + 1), sublane))
        if _cdiv(rows, tr_even) % 2 == 0:
            tr = tr_even
    return tr


# ----------------------------- public wrapper --------------------------------

def chomp2d(x: jax.Array, chomp_size: int, *, post_op=None,
            block_rows: int = 512, block_cols: int | None = None) -> jax.Array:
    """Pallas equivalent of Chomp2d.forward: x[:, :, :, :-chomp_size].

    `post_op` (optional) is an elementwise function fused into the copy
    (e.g. jax.nn.relu); default None reproduces Chomp2d exactly.
    """
    B, N, F, T = x.shape
    assert 0 < chomp_size < T, "chomp_size must be in (0, T)"
    t_out = T - chomp_size

    rows = B * N * F
    x2 = x.reshape(rows, T)                       # contiguous reshape: free

    itemsize = jnp.dtype(x.dtype).itemsize
    sublane = max(8, 32 // itemsize)              # 8 f32 / 16 bf16 / 32 int8
    if block_cols is None:
        # dtype-aware: keep >= 2 KiB contiguous per row in the strided DMA and
        # >= 1024 lanes even for f32 (bigger tiles amortize the ~0.35us/step
        # fixed cost better, which matters most on v7x's faster HBM).
        block_cols = max(1024, 2048 // itemsize)

    # --- static path selection ----------------------------------------------
    small_tail = chomp_size * 8 <= T                    # chomp <= 12.5% of T
    small_out = (t_out <= 512) and (T <= 2 * t_out)     # tiny strided chunks lose to slabs
    use_full_row = small_tail or small_out

    if use_full_row:
        per_row_bytes = (T + t_out) * itemsize
        tr_cap = max(sublane, _TILE_VMEM_BUDGET // (2 * per_row_bytes))
        tr = _pick_row_tile(rows, min(tr_cap, 8192), sublane)
        grid = (pl.cdiv(rows, tr),)
        kernel = _copy_fullrow_kernel if post_op is None else _make_fullrow_kernel(post_op)
        in_specs = [pl.BlockSpec((tr, T), lambda i: (i, 0))]
        out_specs = pl.BlockSpec((tr, t_out), lambda i: (i, 0))
        dim_sem = ("parallel",)
        bytes_accessed = rows * (T + t_out) * itemsize          # full read + chomped write
    else:
        tc = min(block_cols, _round_up(t_out, 128))             # lane-dense columns
        tr_cap = max(sublane, _TILE_VMEM_BUDGET // (4 * tc * itemsize))
        tr = _pick_row_tile(rows, min(tr_cap, block_rows), sublane)
        grid = (pl.cdiv(rows, tr), pl.cdiv(t_out, tc))
        kernel = _copy_tiled_kernel if post_op is None else _make_tiled_kernel(post_op)
        in_specs = [pl.BlockSpec((tr, tc), lambda i, j: (i, j))]
        out_specs = pl.BlockSpec((tr, tc), lambda i, j: (i, j))
        dim_sem = ("parallel", "parallel")
        read_cols = min(T, grid[1] * tc)                         # include edge-tile bleed
        bytes_accessed = rows * (read_cols + t_out) * itemsize

    out2 = pl.pallas_call(
        kernel,
        out_shape=jax.ShapeDtypeStruct((rows, t_out), x.dtype),
        grid=grid,
        in_specs=in_specs,
        out_specs=out_specs,
        compiler_params=pltpu.CompilerParams(
            dimension_semantics=dim_sem,
            vmem_limit_bytes=_VMEM_LIMIT_BYTES),
        cost_estimate=pl.CostEstimate(
            flops=0, transcendentals=0, bytes_accessed=bytes_accessed),
    )(x2)

    return out2.reshape(B, N, F, t_out)


# ----------------------------------- demo ------------------------------------

if __name__ == "__main__":
    k0, k1, k2 = jax.random.split(jax.random.PRNGKey(0), 3)

    # 1) Small shape matching the module layout [B, num_nodes, num_features, T]
    #    (full-row contiguous-slab path: chomp is 3/48 of T).
    b, n, f, t, chomp = 2, 12, 10, 48, 3
    x = jax.random.normal(k0, (b, n, f, t), dtype=jnp.float32)
    out = jax.block_until_ready(chomp2d(x, chomp))
    ref = x[:, :, :, :-chomp]
    assert out.shape == (b, n, f, t - chomp), out.shape
    assert out.dtype == x.dtype
    assert jnp.array_equal(out, ref)

    # 2) Large chomp fraction + long time axis -> 2-D tiled path with a ragged
    #    final column tile (exercises masked edge stores + pipelining).
    b2, n2, f2, t2, c2 = 2, 16, 10, 1400, 300
    xb = jax.random.normal(k1, (b2, n2, f2, t2), dtype=jnp.float32)
    outb = jax.block_until_ready(chomp2d(xb, c2))
    assert jnp.array_equal(outb, xb[:, :, :, :-c2])

    # 3) bf16 exercises the dtype-aware sublane/lane tile sizing.
    xc = jax.random.normal(k2, (b, n, f, t), dtype=jnp.bfloat16)
    outc = jax.block_until_ready(chomp2d(xc, 5))
    assert jnp.array_equal(outc, xc[:, :, :, :-5])

    # 4) Fusion hook: chomp + ReLU in a single HBM round-trip (the kernel is
    #    bandwidth-bound, so the elementwise op is free).
    outd = jax.block_until_ready(chomp2d(x, chomp, post_op=jax.nn.relu))
    assert jnp.array_equal(outd, jax.nn.relu(ref))

    # TODO(synk): in a full TCN block, fuse the preceding conv's bias add and
    # residual add via post_op (or into a larger Pallas kernel) instead of
    # running chomp as a standalone pass.

    print("KERNEL_OK")
</pallas_src>

<mosaic_0001>
module attributes {stable_mosaic.version = 11 : i64} {
  func.func @_copy_fullrow_kernel(%arg0: i32, %arg1: memref<240x48xf32, #tpu.memory_space<vmem>>, %arg2: memref<240x45xf32, #tpu.memory_space<vmem>>) attributes {dimension_semantics = [#tpu.dimension_semantics<parallel>], iteration_bounds = array<i64: 1>, scalar_prefetch = 0 : i64, scratch_operands = 0 : i64, tpu.core_type = #tpu.core_type<tc>, window_params = [{transform_indices = @transform_0, window_bounds = array<i64: 240, 48>}, {transform_indices = @transform_1, window_bounds = array<i64: 240, 45>}]} {
    %c0 = arith.constant 0 : index
    %c0_0 = arith.constant 0 : index
    %0 = vector.load %arg1[%c0, %c0_0] : memref<240x48xf32, #tpu.memory_space<vmem>>, vector<240x45xf32>
    %c0_1 = arith.constant 0 : index
    %c0_2 = arith.constant 0 : index
    %1 = vector.load %arg2[%c0_1, %c0_2] : memref<240x45xf32, #tpu.memory_space<vmem>>, vector<240x45xf32>
    tpu.vector_store %arg2[%c0_1, %c0_2], %0 {strides = array<i32>} : memref<240x45xf32, #tpu.memory_space<vmem>>, vector<240x45xf32>,
    return
  }
  func.func @transform_0(%arg0: i32) -> (i32, i32) {
    %c0_i32 = arith.constant 0 : i32
    %c0_i32_0 = arith.constant 0 : i32
    return %arg0, %c0_i32 : i32, i32
  }
  func.func @transform_1(%arg0: i32) -> (i32, i32) {
    %c0_i32 = arith.constant 0 : i32
    %c0_i32_0 = arith.constant 0 : i32
    return %arg0, %c0_i32 : i32, i32
  }
}

</mosaic_0001>

<bundles_post_ra>
// kernel: tpu_custom_call.1
= control target key start
LH: loop header
LB: loop body
LE: loop exit
PB: predicated region body
PF: predicated region fallthrough
CT: control target
= control target key end

     0   :  { %vm38_vm0 = vcmask 367616   ;;  %s293_s0 = inlined_call_operand.vmem [shape: f32[240,48], index: 0, kind: input, shape index: {}]   ;;  %s294_s1 = inlined_call_operand.vmem [shape: f32[240,45], index: 1, kind: output, shape index: {}]  }
   0x1   :  { %v8_v0 = vld [vmem:[%s293_s0] sm:$0xff]  ;;  %v9_v1 = vld [vmem:[%s293_s0 + $0x8] sm:$0xff]  ;;  %v10_v2 = vld [vmem:[%s293_s0 + $0x10] sm:$0xff] }
   0x2   :  { %39 = vst.msk [vmem:[%s294_s1] sm:$0xff] %vm38_vm0, %v8_v0  ;;  %v11_v3 = vld [vmem:[%s293_s0 + $0x18] sm:$0xff]  ;;  %v12_v4 = vld [vmem:[%s293_s0 + $0x20] sm:$0xff]  ;;  %v13_v5 = vld [vmem:[%s293_s0 + $0x28] sm:$0xff] }
   0x3   :  { %40 = vst.msk [vmem:[%s294_s1 + $0x8] sm:$0xff] %vm38_vm0, %v9_v1  ;;  %v14_v6 = vld [vmem:[%s293_s0 + $0x30] sm:$0xff]  ;;  %v15_v7 = vld [vmem:[%s293_s0 + $0x38] sm:$0xff]  ;;  %v16_v8 = vld [vmem:[%s293_s0 + $0x40] sm:$0xff] }
   0x4   :  { %41 = vst.msk [vmem:[%s294_s1 + $0x10] sm:$0xff] %vm38_vm0, %v10_v2  ;;  %v17_v9 = vld [vmem:[%s293_s0 + $0x48] sm:$0xff]  ;;  %v18_v10 = vld [vmem:[%s293_s0 + $0x50] sm:$0xff]  ;;  %v19_v11 = vld [vmem:[%s293_s0 + $0x58] sm:$0xff] }
   0x5   :  { %42 = vst.msk [vmem:[%s294_s1 + $0x18] sm:$0xff] %vm38_vm0, %v11_v3  ;;  %v20_v12 = vld [vmem:[%s293_s0 + $0x60] sm:$0xff]  ;;  %v21_v13 = vld [vmem:[%s293_s0 + $0x68] sm:$0xff]  ;;  %v22_v14 = vld [vmem:[%s293_s0 + $0x70] sm:$0xff] }
   0x6   :  { %43 = vst.msk [vmem:[%s294_s1 + $0x20] sm:$0xff] %vm38_vm0, %v12_v4  ;;  %v23_v15 = vld [vmem:[%s293_s0 + $0x78] sm:$0xff]  ;;  %v24_v16 = vld [vmem:[%s293_s0 + $0x80] sm:$0xff]  ;;  %v25_v17 = vld [vmem:[%s293_s0 + $0x88] sm:$0xff] }
   0x7   :  { %44 = vst.msk [vmem:[%s294_s1 + $0x28] sm:$0xff] %vm38_vm0, %v13_v5  ;;  %v26_v18 = vld [vmem:[%s293_s0 + $0x90] sm:$0xff]  ;;  %v27_v19 = vld [vmem:[%s293_s0 + $0x98] sm:$0xff]  ;;  %v28_v20 = vld [vmem:[%s293_s0 + $0xa0] sm:$0xff] }
   0x8   :  { %45 = vst.msk [vmem:[%s294_s1 + $0x30] sm:$0xff] %vm38_vm0, %v14_v6  ;;  %v29_v21 = vld [vmem:[%s293_s0 + $0xa8] sm:$0xff]  ;;  %v30_v22 = vld [vmem:[%s293_s0 + $0xb0] sm:$0xff]  ;;  %v31_v23 = vld [vmem:[%s293_s0 + $0xb8] sm:$0xff] }
   0x9   :  { %46 = vst.msk [vmem:[%s294_s1 + $0x38] sm:$0xff] %vm38_vm0, %v15_v7  ;;  %v32_v24 = vld [vmem:[%s293_s0 + $0xc0] sm:$0xff]  ;;  %v33_v25 = vld [vmem:[%s293_s0 + $0xc8] sm:$0xff]  ;;  %v34_v26 = vld [vmem:[%s293_s0 + $0xd0] sm:$0xff] }
   0xa   :  { %47 = vst.msk [vmem:[%s294_s1 + $0x40] sm:$0xff] %vm38_vm0, %v16_v8  ;;  %v35_v27 = vld [vmem:[%s293_s0 + $0xd8] sm:$0xff]  ;;  %v36_v28 = vld [vmem:[%s293_s0 + $0xe0] sm:$0xff]  ;;  %v37_v29 = vld [vmem:[%s293_s0 + $0xe8] sm:$0xff] }
   0xb   :  { %48 = vst.msk [vmem:[%s294_s1 + $0x48] sm:$0xff] %vm38_vm0, %v17_v9 }
   0xc   :  { %49 = vst.msk [vmem:[%s294_s1 + $0x50] sm:$0xff] %vm38_vm0, %v18_v10 }
   0xd   :  { %50 = vst.msk [vmem:[%s294_s1 + $0x58] sm:$0xff] %vm38_vm0, %v19_v11 }
   0xe   :  { %51 = vst.msk [vmem:[%s294_s1 + $0x60] sm:$0xff] %vm38_vm0, %v20_v12 }
   0xf   :  { %52 = vst.msk [vmem:[%s294_s1 + $0x68] sm:$0xff] %vm38_vm0, %v21_v13 }
  0x10   :  { %53 = vst.msk [vmem:[%s294_s1 + $0x70] sm:$0xff] %vm38_vm0, %v22_v14 }
  0x11   :  { %54 = vst.msk [vmem:[%s294_s1 + $0x78] sm:$0xff] %vm38_vm0, %v23_v15 }
  0x12   :  { %55 = vst.msk [vmem:[%s294_s1 + $0x80] sm:$0xff] %vm38_vm0, %v24_v16 }
  0x13   :  { %56 = vst.msk [vmem:[%s294_s1 + $0x88] sm:$0xff] %vm38_vm0, %v25_v17 }
  0x14   :  { %57 = vst.msk [vmem:[%s294_s1 + $0x90] sm:$0xff] %vm38_vm0, %v26_v18 }
  0x15   :  { %58 = vst.msk [vmem:[%s294_s1 + $0x98] sm:$0xff] %vm38_vm0, %v27_v19 }
  0x16   :  { %59 = vst.msk [vmem:[%s294_s1 + $0xa0] sm:$0xff] %vm38_vm0, %v28_v20 }
  0x17   :  { %60 = vst.msk [vmem:[%s294_s1 + $0xa8] sm:$0xff] %vm38_vm0, %v29_v21 }
  0x18   :  { %61 = vst.msk [vmem:[%s294_s1 + $0xb0] sm:$0xff] %vm38_vm0, %v30_v22 }
  0x19   :  { %62 = vst.msk [vmem:[%s294_s1 + $0xb8] sm:$0xff] %vm38_vm0, %v31_v23 }
  0x1a   :  { %63 = vst.msk [vmem:[%s294_s1 + $0xc0] sm:$0xff] %vm38_vm0, %v32_v24 }
  0x1b   :  { %64 = vst.msk [vmem:[%s294_s1 + $0xc8] sm:$0xff] %vm38_vm0, %v33_v25 }
  0x1c   :  { %65 = vst.msk [vmem:[%s294_s1 + $0xd0] sm:$0xff] %vm38_vm0, %v34_v26 }
  0x1d   :  { %66 = vst.msk [vmem:[%s294_s1 + $0xd8] sm:$0xff] %vm38_vm0, %v35_v27 }
  0x1e   :  { %67 = vst.msk [vmem:[%s294_s1 + $0xe0] sm:$0xff] %vm38_vm0, %v36_v28 }
  0x1f   :  { %68 = vst.msk [vmem:[%s294_s1 + $0xe8] sm:$0xff] %vm38_vm0, %v37_v29 }

</bundles_post_ra>
